<compile_context>
chip_gen: v5e
topology: v5e:2x2
jax: 0.10.0
libtpu: 0.0.40
codegen_flags: <defaults>
</compile_context>

<pallas_src>
import functools

import jax
import jax.numpy as jnp
from jax import lax
from jax.experimental import pallas as pl
from jax.experimental.pallas import tpu as pltpu


# 3x3 tap offsets, row-major (matches the fused-weight column order).
_TAP_OFFSETS = tuple((dy, dx) for dy in (-1, 0, 1) for dx in (-1, 0, 1))


def _downblock_kernel(x_ref, w1_ref, t1_ref, w2_ref, t2_ref, mask_ref,
                      selw_ref, down_ref, skip_ref, *, H, W, compute_dtype):
    # x_ref    : (Nb, Cin, H*W)   flattened NCHW input block
    # w1_ref   : (Cout, 9*Cin)    fused conv1 weights (BN1 scale folded in)
    # t1_ref   : (Cout, 1)        folded conv1-bias + BN1 shift (f32)
    # w2_ref   : (Cout, 9*Cout)   fused conv2 weights (BN2 scale folded in)
    # t2_ref   : (Cout, 1)        folded conv2-bias + BN2 shift (f32)
    # mask_ref : (8, Nb*H*W)      0/1 validity of the 8 off-centre taps
    # selw_ref : (W, W/2)         0/1 column-compaction matrix for the pool
    # down_ref : (Nb, Cout, H*W/4)
    # skip_ref : (Nb, Cout, H*W)
    Nb = x_ref.shape[0]
    HW = H * W

    w1 = w1_ref[...]                  # already in compute_dtype
    w2 = w2_ref[...]
    t1 = t1_ref[...]                  # f32
    t2 = t2_ref[...]
    masks = mask_ref[...]             # (8, Nb*HW), compute_dtype
    sel_w = selw_ref[...]             # (W, W/2), f32

    # Fuse the Nb images of this grid step along the lane axis -> (C, Nb*HW):
    # one wide MXU matmul per conv instead of Nb narrow, MXU-underfilling ones.
    xs = [x_ref[b] for b in range(Nb)]
    act0 = xs[0] if Nb == 1 else jnp.concatenate(xs, axis=-1)
    act0 = act0.astype(compute_dtype)

    def im2col(act):
        # act: (C, Nb*HW) in compute_dtype.  Shift the flattened image by each
        # 3x3 tap (static lane roll) and zero the out-of-bounds pixels ("SAME"
        # zero padding).  Shifts never leak across images: every cross-image /
        # cross-row wrap lands exactly on a masked lane.  The centre tap is
        # always valid and skips its mask multiply.
        taps = []
        mi = 0
        for dy, dx in _TAP_OFFSETS:
            off = dy * W + dx
            if off == 0:
                taps.append(act)
            else:
                taps.append(jnp.roll(act, -off, axis=-1) * masks[mi:mi + 1])
                mi += 1
        return jnp.concatenate(taps, axis=0)          # (9*C, Nb*HW)

    # Conv1 (3x3, pad 1) + folded BN1 + ReLU.  One MXU matmul, f32 accumulate.
    y1 = jnp.dot(w1, im2col(act0), preferred_element_type=jnp.float32)
    y1 = jnp.maximum(y1 + t1, 0.0)                    # (Cout, Nb*HW) f32

    # Conv2 (3x3, pad 1) + folded BN2 + ReLU.
    y2 = jnp.dot(w2, im2col(y1.astype(compute_dtype)),
                 preferred_element_type=jnp.float32)
    skip = jnp.maximum(y2 + t2, 0.0)                  # (Cout, Nb*HW) f32

    # MaxPool2d(2): column pair-max via one lane roll; then per output row
    # pair, max the two source rows (static lane slices) and compact the even
    # columns with a tiny (W, W/2) 0/1 matmul, kept in f32 so the selection is
    # exact.  Wrapped lanes from the roll only land on never-selected columns.
    m1 = jnp.maximum(skip, jnp.roll(skip, -1, axis=-1))
    for b in range(Nb):
        skip_ref[b] = skip if Nb == 1 else skip[:, b * HW:(b + 1) * HW]
        pieces = []
        for h2 in range(H // 2):
            p0 = b * HW + 2 * h2 * W
            pair = jnp.maximum(m1[:, p0:p0 + W], m1[:, p0 + W:p0 + 2 * W])
            pieces.append(jnp.dot(pair, sel_w,
                                  preferred_element_type=jnp.float32))
        down_ref[b] = jnp.concatenate(pieces, axis=-1)   # (Cout, H*W/4)


def _tap_masks(H, W, Nb):
    """(8, Nb*H*W) 0/1 validity masks for the 8 off-centre 3x3 taps under SAME
    zero padding, tiled over the Nb lane-fused images (centre tap omitted)."""
    p = jnp.arange(Nb * H * W, dtype=jnp.int32)
    h = (p // W) % H
    w = p % W
    rows = []
    for dy, dx in _TAP_OFFSETS:
        if dy == 0 and dx == 0:
            continue
        rows.append((h + dy >= 0) & (h + dy < H) & (w + dx >= 0) & (w + dx < W))
    return jnp.stack(rows, axis=0).astype(jnp.float32)


def _pool_colsel(W):
    """(W, W//2) 0/1 matrix: output column q selects input column 2q."""
    p = jnp.arange(W, dtype=jnp.int32)
    q = jnp.arange(W // 2, dtype=jnp.int32)
    return (p[:, None] == 2 * q[None, :]).astype(jnp.float32)


def _vmem_limit_bytes():
    """Per-generation scoped-VMEM budget (~physical - 8 MiB, clamped)."""
    try:
        cap = int(pltpu.get_tpu_info().vmem_capacity_bytes)
        return max(32 << 20, min(cap - (8 << 20), 96 << 20))
    except Exception:
        return 32 << 20


@functools.partial(jax.jit, static_argnames=("compute_dtype", "batch_block"))
def downblock_pallas(x_nchw, params, *, compute_dtype=jnp.float32,
                     batch_block=1):
    """x_nchw: (N, Cin, H, W) float32.  Returns (down, skip) in NCHW."""
    w1, t1, w2, t2 = params           # BN scale pre-folded into w1 / w2 (f32)
    N, Cin, H, W = x_nchw.shape
    Cout = w1.shape[0]
    assert H % 2 == 0 and W % 2 == 0, "MaxPool2d(2) needs even H, W"
    Nb = batch_block
    assert N % Nb == 0, "batch_block must divide N"
    HW, HW4 = H * W, (H // 2) * (W // 2)

    # Pad Cin up to the 8-sublane packing multiple so each im2col tap occupies
    # whole sublane groups; the matching fused-weight columns are zero so the
    # results are unchanged.  (No transpose / jnp.pad of the spatial dims.)
    Cin_p = -(-Cin // 8) * 8
    x_flat = x_nchw.reshape(N, Cin, HW)
    if Cin_p != Cin:
        x_flat = jnp.pad(x_flat, ((0, 0), (0, Cin_p - Cin), (0, 0)))
        w1 = jnp.pad(w1.reshape(Cout, 9, Cin),
                     ((0, 0), (0, 0), (0, Cin_p - Cin))).reshape(Cout,
                                                                 9 * Cin_p)

    # Matmul operands in compute_dtype (bf16 on v6e/v7x, f32 on v5e / exact);
    # BN fold and channel padding were done in f32 above.
    w1c = w1.astype(compute_dtype)
    w2c = w2.astype(compute_dtype)
    masks = _tap_masks(H, W, Nb).astype(compute_dtype)   # (8, Nb*HW)
    selw = _pool_colsel(W)                               # (W, W//2) f32

    kernel = functools.partial(_downblock_kernel, H=H, W=W,
                               compute_dtype=compute_dtype)

    grid_spec = pltpu.PrefetchScalarGridSpec(
        num_scalar_prefetch=0,
        grid=(N // Nb,),
        in_specs=[
            pl.BlockSpec((Nb, Cin_p, HW), lambda n: (n, 0, 0)),
            pl.BlockSpec((Cout, 9 * Cin_p), lambda n: (0, 0)),
            pl.BlockSpec((Cout, 1), lambda n: (0, 0)),
            pl.BlockSpec((Cout, 9 * Cout), lambda n: (0, 0)),
            pl.BlockSpec((Cout, 1), lambda n: (0, 0)),
            pl.BlockSpec((8, Nb * HW), lambda n: (0, 0)),
            pl.BlockSpec((W, W // 2), lambda n: (0, 0)),
        ],
        out_specs=[
            pl.BlockSpec((Nb, Cout, HW4), lambda n: (n, 0, 0)),
            pl.BlockSpec((Nb, Cout, HW), lambda n: (n, 0, 0)),
        ],
    )

    down_flat, skip_flat = pl.pallas_call(
        kernel,
        out_shape=(
            jax.ShapeDtypeStruct((N, Cout, HW4), jnp.float32),
            jax.ShapeDtypeStruct((N, Cout, HW), jnp.float32),
        ),
        grid_spec=grid_spec,
        compiler_params=pltpu.CompilerParams(
            dimension_semantics=("parallel",),
            vmem_limit_bytes=_vmem_limit_bytes(),
        ),
    )(x_flat, w1c, t1, w2c, t2, masks, selw)

    # Free (contiguous) reshapes back to NCHW -- no output transposes.
    down = down_flat.reshape(N, Cout, H // 2, W // 2)
    skip = skip_flat.reshape(N, Cout, H, W)
    return down, skip


def make_params(key, cin, cout, eps=1e-5):
    """Synthetic PyTorch-like parameters; conv bias + eval-mode BN folded into
    the fused matmul weights (scale) and a per-channel bias (shift)."""
    ks = jax.random.split(key, 12)

    def conv_layer(k_w, k_b, k_g, k_be, k_m, k_v, c_in, c_out):
        w_hwio = jax.random.normal(k_w, (3, 3, c_in, c_out), jnp.float32) * 0.1
        b = jax.random.normal(k_b, (c_out,), jnp.float32) * 0.1
        gamma = 1.0 + 0.1 * jax.random.normal(k_g, (c_out,), jnp.float32)
        beta = 0.1 * jax.random.normal(k_be, (c_out,), jnp.float32)
        mean = 0.1 * jax.random.normal(k_m, (c_out,), jnp.float32)
        var = jax.random.uniform(k_v, (c_out,), jnp.float32, 0.5, 1.5)
        scale = gamma / jnp.sqrt(var + eps)           # BN scale
        bias = beta + (b - mean) * scale              # conv bias + BN shift
        # Fused matmul weights (Cout, 9*Cin); columns are tap-major /
        # input-channel-minor to match the kernel's im2col rows; the BN scale
        # is folded in (f32, before any bf16 cast in the wrapper).
        w_fused = (w_hwio.reshape(9 * c_in, c_out) * scale[None, :]).T
        return (w_hwio, w_fused,
                scale.reshape(c_out, 1), bias.reshape(c_out, 1))

    w1_hwio, w1, s1, t1 = conv_layer(*ks[0:6], cin, cout)
    w2_hwio, w2, s2, t2 = conv_layer(*ks[6:12], cout, cout)
    kernel_params = (w1, t1, w2, t2)
    ref_params = (w1_hwio, s1, t1, w2_hwio, s2, t2)
    return kernel_params, ref_params


def downblock_reference(x_nchw, ref_params):
    """Pure-JAX/XLA reference (same folded eval-mode BN)."""
    (w1, s1, t1, w2, s2, t2) = ref_params
    dn = ("NCHW", "HWIO", "NCHW")
    y = lax.conv_general_dilated(x_nchw, w1, (1, 1), "SAME",
                                 dimension_numbers=dn)
    y = jnp.maximum(y * s1.reshape(1, -1, 1, 1) + t1.reshape(1, -1, 1, 1), 0.0)
    y = lax.conv_general_dilated(y, w2, (1, 1), "SAME", dimension_numbers=dn)
    skip = jnp.maximum(y * s2.reshape(1, -1, 1, 1) + t2.reshape(1, -1, 1, 1),
                       0.0)
    N, C, H, W = skip.shape
    down = jnp.max(skip.reshape(N, C, H // 2, 2, W // 2, 2), axis=(3, 5))
    return down, skip


if __name__ == "__main__":
    key = jax.random.PRNGKey(0)
    k_x, k_p = jax.random.split(key)

    N, Cin, H, W = 2, 4, 16, 16
    Cout = 8
    x = jax.random.normal(k_x, (N, Cin, H, W), jnp.float32)

    kernel_params, ref_params = make_params(k_p, Cin, Cout)
    down_exp, skip_exp = downblock_reference(x, ref_params)

    # Exact f32 path; batch_block=1 keeps 2 parallel grid steps (v7x-friendly).
    down, skip = downblock_pallas(x, kernel_params)
    jax.block_until_ready((down, skip))
    assert down.shape == (N, Cout, H // 2, W // 2)
    assert skip.shape == (N, Cout, H, W)
    assert jnp.allclose(skip, skip_exp, rtol=1e-4, atol=1e-4)
    assert jnp.allclose(down, down_exp, rtol=1e-4, atol=1e-4)

    # bf16 MXU-operand path (v6e / v7x), batch fused into one wide matmul per
    # conv (batch_block=2); f32 accumulation, f32 epilogue and outputs.
    down_bf, skip_bf = downblock_pallas(x, kernel_params,
                                        compute_dtype=jnp.bfloat16,
                                        batch_block=2)
    jax.block_until_ready((down_bf, skip_bf))
    assert jnp.allclose(skip_bf, skip_exp, rtol=5e-2, atol=5e-2)
    assert jnp.allclose(down_bf, down_exp, rtol=5e-2, atol=5e-2)

    print("KERNEL_OK")
</pallas_src>

<mosaic_0001>
module attributes {stable_mosaic.version = 11 : i64} {
  func.func @_downblock_kernel(%arg0: i32, %arg1: memref<1x8x256xf32, #tpu.memory_space<vmem>>, %arg2: memref<8x72xf32, #tpu.memory_space<vmem>>, %arg3: memref<8x1xf32, #tpu.memory_space<vmem>>, %arg4: memref<8x72xf32, #tpu.memory_space<vmem>>, %arg5: memref<8x1xf32, #tpu.memory_space<vmem>>, %arg6: memref<8x256xf32, #tpu.memory_space<vmem>>, %arg7: memref<16x8xf32, #tpu.memory_space<vmem>>, %arg8: memref<1x8x64xf32, #tpu.memory_space<vmem>>, %arg9: memref<1x8x256xf32, #tpu.memory_space<vmem>>) attributes {dimension_semantics = [#tpu.dimension_semantics<parallel>], iteration_bounds = array<i64: 2>, scalar_prefetch = 0 : i64, scratch_operands = 0 : i64, tpu.core_type = #tpu.core_type<tc>, window_params = [{transform_indices = @transform_0, window_bounds = array<i64: 1, 8, 256>}, {pipeline_mode = #tpu.pipeline_mode<synchronous>, transform_indices = @transform_1, window_bounds = array<i64: 8, 72>}, {pipeline_mode = #tpu.pipeline_mode<synchronous>, transform_indices = @transform_2, window_bounds = array<i64: 8, 1>}, {pipeline_mode = #tpu.pipeline_mode<synchronous>, transform_indices = @transform_3, window_bounds = array<i64: 8, 72>}, {pipeline_mode = #tpu.pipeline_mode<synchronous>, transform_indices = @transform_4, window_bounds = array<i64: 8, 1>}, {pipeline_mode = #tpu.pipeline_mode<synchronous>, transform_indices = @transform_5, window_bounds = array<i64: 8, 256>}, {pipeline_mode = #tpu.pipeline_mode<synchronous>, transform_indices = @transform_6, window_bounds = array<i64: 16, 8>}, {transform_indices = @transform_7, window_bounds = array<i64: 1, 8, 64>}, {transform_indices = @transform_8, window_bounds = array<i64: 1, 8, 256>}]} {
    %c0 = arith.constant 0 : index
    %c0_0 = arith.constant 0 : index
    %0 = vector.load %arg2[%c0, %c0_0] : memref<8x72xf32, #tpu.memory_space<vmem>>, vector<8x72xf32>
    %c0_1 = arith.constant 0 : index
    %c0_2 = arith.constant 0 : index
    %1 = vector.load %arg4[%c0_1, %c0_2] : memref<8x72xf32, #tpu.memory_space<vmem>>, vector<8x72xf32>
    %c0_3 = arith.constant 0 : index
    %c0_4 = arith.constant 0 : index
    %2 = vector.load %arg3[%c0_3, %c0_4] : memref<8x1xf32, #tpu.memory_space<vmem>>, vector<8x1xf32>
    %c0_5 = arith.constant 0 : index
    %c0_6 = arith.constant 0 : index
    %3 = vector.load %arg5[%c0_5, %c0_6] : memref<8x1xf32, #tpu.memory_space<vmem>>, vector<8x1xf32>
    %c0_7 = arith.constant 0 : index
    %c0_8 = arith.constant 0 : index
    %4 = vector.load %arg6[%c0_7, %c0_8] : memref<8x256xf32, #tpu.memory_space<vmem>>, vector<8x256xf32>
    %c0_9 = arith.constant 0 : index
    %c0_10 = arith.constant 0 : index
    %5 = vector.load %arg7[%c0_9, %c0_10] : memref<16x8xf32, #tpu.memory_space<vmem>>, vector<16x8xf32>
    %c0_11 = arith.constant 0 : index
    %c0_12 = arith.constant 0 : index
    %c0_13 = arith.constant 0 : index
    %6 = vector.load %arg1[%c0_11, %c0_12, %c0_13] : memref<1x8x256xf32, #tpu.memory_space<vmem>>, vector<1x8x256xf32>
    %7 = vector.shape_cast %6 : vector<1x8x256xf32> to vector<8x256xf32>
    %8 = vector.extract_strided_slice %7 {offsets = [0, 239], sizes = [8, 17], strides = [1, 1]} : vector<8x256xf32> to vector<8x17xf32>
    %9 = vector.extract_strided_slice %7 {offsets = [0, 0], sizes = [8, 239], strides = [1, 1]} : vector<8x256xf32> to vector<8x239xf32>
    %10 = tpu.concatenate %8, %9 in 1 : vector<8x17xf32>, vector<8x239xf32> -> vector<8x256xf32>
    %11 = vector.extract_strided_slice %4 {offsets = [0, 0], sizes = [1, 256], strides = [1, 1]} : vector<8x256xf32> to vector<1x256xf32>
    %12 = vector.broadcast %11 : vector<1x256xf32> to vector<8x256xf32>
    %13 = arith.mulf %10, %12 : vector<8x256xf32>
    %14 = vector.extract_strided_slice %7 {offsets = [0, 240], sizes = [8, 16], strides = [1, 1]} : vector<8x256xf32> to vector<8x16xf32>
    %15 = vector.extract_strided_slice %7 {offsets = [0, 0], sizes = [8, 240], strides = [1, 1]} : vector<8x256xf32> to vector<8x240xf32>
    %16 = tpu.concatenate %14, %15 in 1 : vector<8x16xf32>, vector<8x240xf32> -> vector<8x256xf32>
    %17 = vector.extract_strided_slice %4 {offsets = [1, 0], sizes = [1, 256], strides = [1, 1]} : vector<8x256xf32> to vector<1x256xf32>
    %18 = vector.broadcast %17 : vector<1x256xf32> to vector<8x256xf32>
    %19 = arith.mulf %16, %18 : vector<8x256xf32>
    %20 = vector.extract_strided_slice %7 {offsets = [0, 241], sizes = [8, 15], strides = [1, 1]} : vector<8x256xf32> to vector<8x15xf32>
    %21 = vector.extract_strided_slice %7 {offsets = [0, 0], sizes = [8, 241], strides = [1, 1]} : vector<8x256xf32> to vector<8x241xf32>
    %22 = tpu.concatenate %20, %21 in 1 : vector<8x15xf32>, vector<8x241xf32> -> vector<8x256xf32>
    %23 = vector.extract_strided_slice %4 {offsets = [2, 0], sizes = [1, 256], strides = [1, 1]} : vector<8x256xf32> to vector<1x256xf32>
    %24 = vector.broadcast %23 : vector<1x256xf32> to vector<8x256xf32>
    %25 = arith.mulf %22, %24 : vector<8x256xf32>
    %26 = vector.extract_strided_slice %7 {offsets = [0, 255], sizes = [8, 1], strides = [1, 1]} : vector<8x256xf32> to vector<8x1xf32>
    %27 = vector.extract_strided_slice %7 {offsets = [0, 0], sizes = [8, 255], strides = [1, 1]} : vector<8x256xf32> to vector<8x255xf32>
    %28 = tpu.concatenate %26, %27 in 1 : vector<8x1xf32>, vector<8x255xf32> -> vector<8x256xf32>
    %29 = vector.extract_strided_slice %4 {offsets = [3, 0], sizes = [1, 256], strides = [1, 1]} : vector<8x256xf32> to vector<1x256xf32>
    %30 = vector.broadcast %29 : vector<1x256xf32> to vector<8x256xf32>
    %31 = arith.mulf %28, %30 : vector<8x256xf32>
    %32 = vector.extract_strided_slice %7 {offsets = [0, 1], sizes = [8, 255], strides = [1, 1]} : vector<8x256xf32> to vector<8x255xf32>
    %33 = vector.extract_strided_slice %7 {offsets = [0, 0], sizes = [8, 1], strides = [1, 1]} : vector<8x256xf32> to vector<8x1xf32>
    %34 = tpu.concatenate %32, %33 in 1 : vector<8x255xf32>, vector<8x1xf32> -> vector<8x256xf32>
    %35 = vector.extract_strided_slice %4 {offsets = [4, 0], sizes = [1, 256], strides = [1, 1]} : vector<8x256xf32> to vector<1x256xf32>
    %36 = vector.broadcast %35 : vector<1x256xf32> to vector<8x256xf32>
    %37 = arith.mulf %34, %36 : vector<8x256xf32>
    %38 = vector.extract_strided_slice %7 {offsets = [0, 15], sizes = [8, 241], strides = [1, 1]} : vector<8x256xf32> to vector<8x241xf32>
    %39 = vector.extract_strided_slice %7 {offsets = [0, 0], sizes = [8, 15], strides = [1, 1]} : vector<8x256xf32> to vector<8x15xf32>
    %40 = tpu.concatenate %38, %39 in 1 : vector<8x241xf32>, vector<8x15xf32> -> vector<8x256xf32>
    %41 = vector.extract_strided_slice %4 {offsets = [5, 0], sizes = [1, 256], strides = [1, 1]} : vector<8x256xf32> to vector<1x256xf32>
    %42 = vector.broadcast %41 : vector<1x256xf32> to vector<8x256xf32>
    %43 = arith.mulf %40, %42 : vector<8x256xf32>
    %44 = vector.extract_strided_slice %7 {offsets = [0, 16], sizes = [8, 240], strides = [1, 1]} : vector<8x256xf32> to vector<8x240xf32>
    %45 = vector.extract_strided_slice %7 {offsets = [0, 0], sizes = [8, 16], strides = [1, 1]} : vector<8x256xf32> to vector<8x16xf32>
    %46 = tpu.concatenate %44, %45 in 1 : vector<8x240xf32>, vector<8x16xf32> -> vector<8x256xf32>
    %47 = vector.extract_strided_slice %4 {offsets = [6, 0], sizes = [1, 256], strides = [1, 1]} : vector<8x256xf32> to vector<1x256xf32>
    %48 = vector.broadcast %47 : vector<1x256xf32> to vector<8x256xf32>
    %49 = arith.mulf %46, %48 : vector<8x256xf32>
    %50 = vector.extract_strided_slice %7 {offsets = [0, 17], sizes = [8, 239], strides = [1, 1]} : vector<8x256xf32> to vector<8x239xf32>
    %51 = vector.extract_strided_slice %7 {offsets = [0, 0], sizes = [8, 17], strides = [1, 1]} : vector<8x256xf32> to vector<8x17xf32>
    %52 = tpu.concatenate %50, %51 in 1 : vector<8x239xf32>, vector<8x17xf32> -> vector<8x256xf32>
    %53 = vector.extract_strided_slice %4 {offsets = [7, 0], sizes = [1, 256], strides = [1, 1]} : vector<8x256xf32> to vector<1x256xf32>
    %54 = vector.broadcast %53 : vector<1x256xf32> to vector<8x256xf32>
    %55 = arith.mulf %52, %54 : vector<8x256xf32>
    %56 = tpu.concatenate %13, %19, %25, %31, %7, %37, %43, %49, %55 in 0 : vector<8x256xf32>, vector<8x256xf32>, vector<8x256xf32>, vector<8x256xf32>, vector<8x256xf32>, vector<8x256xf32>, vector<8x256xf32>, vector<8x256xf32>, vector<8x256xf32> -> vector<72x256xf32>
    %cst = arith.constant dense<0.000000e+00> : vector<8x256xf32>
    %57 = tpu.matmul %0, %56, %cst {dimension_numbers = #tpu.dot_dimension_numbers<[1], [0], [0], [1], [0, 0, 1, 1], [], []>} : vector<8x72xf32>, vector<72x256xf32>, vector<8x256xf32> -> vector<8x256xf32>
    %58 = vector.broadcast %2 : vector<8x1xf32> to vector<8x256xf32>
    %59 = arith.addf %57, %58 : vector<8x256xf32>
    %cst_14 = arith.constant 0.000000e+00 : f32
    %60 = vector.broadcast %cst_14 : f32 to vector<8x256xf32>
    %61 = arith.maximumf %59, %60 : vector<8x256xf32>
    %62 = vector.extract_strided_slice %61 {offsets = [0, 239], sizes = [8, 17], strides = [1, 1]} : vector<8x256xf32> to vector<8x17xf32>
    %63 = vector.extract_strided_slice %61 {offsets = [0, 0], sizes = [8, 239], strides = [1, 1]} : vector<8x256xf32> to vector<8x239xf32>
    %64 = tpu.concatenate %62, %63 in 1 : vector<8x17xf32>, vector<8x239xf32> -> vector<8x256xf32>
    %65 = vector.extract_strided_slice %4 {offsets = [0, 0], sizes = [1, 256], strides = [1, 1]} : vector<8x256xf32> to vector<1x256xf32>
    %66 = vector.broadcast %65 : vector<1x256xf32> to vector<8x256xf32>
    %67 = arith.mulf %64, %66 : vector<8x256xf32>
    %68 = vector.extract_strided_slice %61 {offsets = [0, 240], sizes = [8, 16], strides = [1, 1]} : vector<8x256xf32> to vector<8x16xf32>
    %69 = vector.extract_strided_slice %61 {offsets = [0, 0], sizes = [8, 240], strides = [1, 1]} : vector<8x256xf32> to vector<8x240xf32>
    %70 = tpu.concatenate %68, %69 in 1 : vector<8x16xf32>, vector<8x240xf32> -> vector<8x256xf32>
    %71 = vector.extract_strided_slice %4 {offsets = [1, 0], sizes = [1, 256], strides = [1, 1]} : vector<8x256xf32> to vector<1x256xf32>
    %72 = vector.broadcast %71 : vector<1x256xf32> to vector<8x256xf32>
    %73 = arith.mulf %70, %72 : vector<8x256xf32>
    %74 = vector.extract_strided_slice %61 {offsets = [0, 241], sizes = [8, 15], strides = [1, 1]} : vector<8x256xf32> to vector<8x15xf32>
    %75 = vector.extract_strided_slice %61 {offsets = [0, 0], sizes = [8, 241], strides = [1, 1]} : vector<8x256xf32> to vector<8x241xf32>
    %76 = tpu.concatenate %74, %75 in 1 : vector<8x15xf32>, vector<8x241xf32> -> vector<8x256xf32>
    %77 = vector.extract_strided_slice %4 {offsets = [2, 0], sizes = [1, 256], strides = [1, 1]} : vector<8x256xf32> to vector<1x256xf32>
    %78 = vector.broadcast %77 : vector<1x256xf32> to vector<8x256xf32>
    %79 = arith.mulf %76, %78 : vector<8x256xf32>
    %80 = vector.extract_strided_slice %61 {offsets = [0, 255], sizes = [8, 1], strides = [1, 1]} : vector<8x256xf32> to vector<8x1xf32>
    %81 = vector.extract_strided_slice %61 {offsets = [0, 0], sizes = [8, 255], strides = [1, 1]} : vector<8x256xf32> to vector<8x255xf32>
    %82 = tpu.concatenate %80, %81 in 1 : vector<8x1xf32>, vector<8x255xf32> -> vector<8x256xf32>
    %83 = vector.extract_strided_slice %4 {offsets = [3, 0], sizes = [1, 256], strides = [1, 1]} : vector<8x256xf32> to vector<1x256xf32>
    %84 = vector.broadcast %83 : vector<1x256xf32> to vector<8x256xf32>
    %85 = arith.mulf %82, %84 : vector<8x256xf32>
    %86 = vector.extract_strided_slice %61 {offsets = [0, 1], sizes = [8, 255], strides = [1, 1]} : vector<8x256xf32> to vector<8x255xf32>
    %87 = vector.extract_strided_slice %61 {offsets = [0, 0], sizes = [8, 1], strides = [1, 1]} : vector<8x256xf32> to vector<8x1xf32>
    %88 = tpu.concatenate %86, %87 in 1 : vector<8x255xf32>, vector<8x1xf32> -> vector<8x256xf32>
    %89 = vector.extract_strided_slice %4 {offsets = [4, 0], sizes = [1, 256], strides = [1, 1]} : vector<8x256xf32> to vector<1x256xf32>
    %90 = vector.broadcast %89 : vector<1x256xf32> to vector<8x256xf32>
    %91 = arith.mulf %88, %90 : vector<8x256xf32>
    %92 = vector.extract_strided_slice %61 {offsets = [0, 15], sizes = [8, 241], strides = [1, 1]} : vector<8x256xf32> to vector<8x241xf32>
    %93 = vector.extract_strided_slice %61 {offsets = [0, 0], sizes = [8, 15], strides = [1, 1]} : vector<8x256xf32> to vector<8x15xf32>
    %94 = tpu.concatenate %92, %93 in 1 : vector<8x241xf32>, vector<8x15xf32> -> vector<8x256xf32>
    %95 = vector.extract_strided_slice %4 {offsets = [5, 0], sizes = [1, 256], strides = [1, 1]} : vector<8x256xf32> to vector<1x256xf32>
    %96 = vector.broadcast %95 : vector<1x256xf32> to vector<8x256xf32>
    %97 = arith.mulf %94, %96 : vector<8x256xf32>
    %98 = vector.extract_strided_slice %61 {offsets = [0, 16], sizes = [8, 240], strides = [1, 1]} : vector<8x256xf32> to vector<8x240xf32>
    %99 = vector.extract_strided_slice %61 {offsets = [0, 0], sizes = [8, 16], strides = [1, 1]} : vector<8x256xf32> to vector<8x16xf32>
    %100 = tpu.concatenate %98, %99 in 1 : vector<8x240xf32>, vector<8x16xf32> -> vector<8x256xf32>
    %101 = vector.extract_strided_slice %4 {offsets = [6, 0], sizes = [1, 256], strides = [1, 1]} : vector<8x256xf32> to vector<1x256xf32>
    %102 = vector.broadcast %101 : vector<1x256xf32> to vector<8x256xf32>
    %103 = arith.mulf %100, %102 : vector<8x256xf32>
    %104 = vector.extract_strided_slice %61 {offsets = [0, 17], sizes = [8, 239], strides = [1, 1]} : vector<8x256xf32> to vector<8x239xf32>
    %105 = vector.extract_strided_slice %61 {offsets = [0, 0], sizes = [8, 17], strides = [1, 1]} : vector<8x256xf32> to vector<8x17xf32>
    %106 = tpu.concatenate %104, %105 in 1 : vector<8x239xf32>, vector<8x17xf32> -> vector<8x256xf32>
    %107 = vector.extract_strided_slice %4 {offsets = [7, 0], sizes = [1, 256], strides = [1, 1]} : vector<8x256xf32> to vector<1x256xf32>
    %108 = vector.broadcast %107 : vector<1x256xf32> to vector<8x256xf32>
    %109 = arith.mulf %106, %108 : vector<8x256xf32>
    %110 = tpu.concatenate %67, %73, %79, %85, %61, %91, %97, %103, %109 in 0 : vector<8x256xf32>, vector<8x256xf32>, vector<8x256xf32>, vector<8x256xf32>, vector<8x256xf32>, vector<8x256xf32>, vector<8x256xf32>, vector<8x256xf32>, vector<8x256xf32> -> vector<72x256xf32>
    %cst_15 = arith.constant dense<0.000000e+00> : vector<8x256xf32>
    %111 = tpu.matmul %1, %110, %cst_15 {dimension_numbers = #tpu.dot_dimension_numbers<[1], [0], [0], [1], [0, 0, 1, 1], [], []>} : vector<8x72xf32>, vector<72x256xf32>, vector<8x256xf32> -> vector<8x256xf32>
    %112 = vector.broadcast %3 : vector<8x1xf32> to vector<8x256xf32>
    %113 = arith.addf %111, %112 : vector<8x256xf32>
    %cst_16 = arith.constant 0.000000e+00 : f32
    %114 = vector.broadcast %cst_16 : f32 to vector<8x256xf32>
    %115 = arith.maximumf %113, %114 : vector<8x256xf32>
    %116 = vector.extract_strided_slice %115 {offsets = [0, 1], sizes = [8, 255], strides = [1, 1]} : vector<8x256xf32> to vector<8x255xf32>
    %117 = vector.extract_strided_slice %115 {offsets = [0, 0], sizes = [8, 1], strides = [1, 1]} : vector<8x256xf32> to vector<8x1xf32>
    %118 = tpu.concatenate %116, %117 in 1 : vector<8x255xf32>, vector<8x1xf32> -> vector<8x256xf32>
    %119 = arith.maximumf %115, %118 : vector<8x256xf32>
    %c0_17 = arith.constant 0 : index
    %c0_18 = arith.constant 0 : index
    %c0_19 = arith.constant 0 : index
    %120 = vector.load %arg9[%c0_17, %c0_18, %c0_19] : memref<1x8x256xf32, #tpu.memory_space<vmem>>, vector<1x8x256xf32>
    %121 = vector.shape_cast %120 : vector<1x8x256xf32> to vector<8x256xf32>
    %122 = vector.shape_cast %115 : vector<8x256xf32> to vector<1x8x256xf32>
    tpu.vector_store %arg9[%c0_17, %c0_18, %c0_19], %122 {strides = array<i32>} : memref<1x8x256xf32, #tpu.memory_space<vmem>>, vector<1x8x256xf32>,
    %123 = vector.extract_strided_slice %119 {offsets = [0, 0], sizes = [8, 16], strides = [1, 1]} : vector<8x256xf32> to vector<8x16xf32>
    %124 = vector.extract_strided_slice %119 {offsets = [0, 16], sizes = [8, 16], strides = [1, 1]} : vector<8x256xf32> to vector<8x16xf32>
    %125 = arith.maximumf %123, %124 : vector<8x16xf32>
    %cst_20 = arith.constant dense<0.000000e+00> : vector<8x8xf32>
    %126 = tpu.matmul %125, %5, %cst_20 {dimension_numbers = #tpu.dot_dimension_numbers<[1], [0], [0], [1], [0, 0, 1, 1], [], []>} : vector<8x16xf32>, vector<16x8xf32>, vector<8x8xf32> -> vector<8x8xf32>
    %127 = vector.extract_strided_slice %119 {offsets = [0, 32], sizes = [8, 16], strides = [1, 1]} : vector<8x256xf32> to vector<8x16xf32>
    %128 = vector.extract_strided_slice %119 {offsets = [0, 48], sizes = [8, 16], strides = [1, 1]} : vector<8x256xf32> to vector<8x16xf32>
    %129 = arith.maximumf %127, %128 : vector<8x16xf32>
    %cst_21 = arith.constant dense<0.000000e+00> : vector<8x8xf32>
    %130 = tpu.matmul %129, %5, %cst_21 {dimension_numbers = #tpu.dot_dimension_numbers<[1], [0], [0], [1], [0, 0, 1, 1], [], []>} : vector<8x16xf32>, vector<16x8xf32>, vector<8x8xf32> -> vector<8x8xf32>
    %131 = vector.extract_strided_slice %119 {offsets = [0, 64], sizes = [8, 16], strides = [1, 1]} : vector<8x256xf32> to vector<8x16xf32>
    %132 = vector.extract_strided_slice %119 {offsets = [0, 80], sizes = [8, 16], strides = [1, 1]} : vector<8x256xf32> to vector<8x16xf32>
    %133 = arith.maximumf %131, %132 : vector<8x16xf32>
    %cst_22 = arith.constant dense<0.000000e+00> : vector<8x8xf32>
    %134 = tpu.matmul %133, %5, %cst_22 {dimension_numbers = #tpu.dot_dimension_numbers<[1], [0], [0], [1], [0, 0, 1, 1], [], []>} : vector<8x16xf32>, vector<16x8xf32>, vector<8x8xf32> -> vector<8x8xf32>
    %135 = vector.extract_strided_slice %119 {offsets = [0, 96], sizes = [8, 16], strides = [1, 1]} : vector<8x256xf32> to vector<8x16xf32>
    %136 = vector.extract_strided_slice %119 {offsets = [0, 112], sizes = [8, 16], strides = [1, 1]} : vector<8x256xf32> to vector<8x16xf32>
    %137 = arith.maximumf %135, %136 : vector<8x16xf32>
    %cst_23 = arith.constant dense<0.000000e+00> : vector<8x8xf32>
    %138 = tpu.matmul %137, %5, %cst_23 {dimension_numbers = #tpu.dot_dimension_numbers<[1], [0], [0], [1], [0, 0, 1, 1], [], []>} : vector<8x16xf32>, vector<16x8xf32>, vector<8x8xf32> -> vector<8x8xf32>
    %139 = vector.extract_strided_slice %119 {offsets = [0, 128], sizes = [8, 16], strides = [1, 1]} : vector<8x256xf32> to vector<8x16xf32>
    %140 = vector.extract_strided_slice %119 {offsets = [0, 144], sizes = [8, 16], strides = [1, 1]} : vector<8x256xf32> to vector<8x16xf32>
    %141 = arith.maximumf %139, %140 : vector<8x16xf32>
    %cst_24 = arith.constant dense<0.000000e+00> : vector<8x8xf32>
    %142 = tpu.matmul %141, %5, %cst_24 {dimension_numbers = #tpu.dot_dimension_numbers<[1], [0], [0], [1], [0, 0, 1, 1], [], []>} : vector<8x16xf32>, vector<16x8xf32>, vector<8x8xf32> -> vector<8x8xf32>
    %143 = vector.extract_strided_slice %119 {offsets = [0, 160], sizes = [8, 16], strides = [1, 1]} : vector<8x256xf32> to vector<8x16xf32>
    %144 = vector.extract_strided_slice %119 {offsets = [0, 176], sizes = [8, 16], strides = [1, 1]} : vector<8x256xf32> to vector<8x16xf32>
    %145 = arith.maximumf %143, %144 : vector<8x16xf32>
    %cst_25 = arith.constant dense<0.000000e+00> : vector<8x8xf32>
    %146 = tpu.matmul %145, %5, %cst_25 {dimension_numbers = #tpu.dot_dimension_numbers<[1], [0], [0], [1], [0, 0, 1, 1], [], []>} : vector<8x16xf32>, vector<16x8xf32>, vector<8x8xf32> -> vector<8x8xf32>
    %147 = vector.extract_strided_slice %119 {offsets = [0, 192], sizes = [8, 16], strides = [1, 1]} : vector<8x256xf32> to vector<8x16xf32>
    %148 = vector.extract_strided_slice %119 {offsets = [0, 208], sizes = [8, 16], strides = [1, 1]} : vector<8x256xf32> to vector<8x16xf32>
    %149 = arith.maximumf %147, %148 : vector<8x16xf32>
    %cst_26 = arith.constant dense<0.000000e+00> : vector<8x8xf32>
    %150 = tpu.matmul %149, %5, %cst_26 {dimension_numbers = #tpu.dot_dimension_numbers<[1], [0], [0], [1], [0, 0, 1, 1], [], []>} : vector<8x16xf32>, vector<16x8xf32>, vector<8x8xf32> -> vector<8x8xf32>
    %151 = vector.extract_strided_slice %119 {offsets = [0, 224], sizes = [8, 16], strides = [1, 1]} : vector<8x256xf32> to vector<8x16xf32>
    %152 = vector.extract_strided_slice %119 {offsets = [0, 240], sizes = [8, 16], strides = [1, 1]} : vector<8x256xf32> to vector<8x16xf32>
    %153 = arith.maximumf %151, %152 : vector<8x16xf32>
    %cst_27 = arith.constant dense<0.000000e+00> : vector<8x8xf32>
    %154 = tpu.matmul %153, %5, %cst_27 {dimension_numbers = #tpu.dot_dimension_numbers<[1], [0], [0], [1], [0, 0, 1, 1], [], []>} : vector<8x16xf32>, vector<16x8xf32>, vector<8x8xf32> -> vector<8x8xf32>
    %155 = tpu.concatenate %126, %130, %134, %138, %142, %146, %150, %154 in 1 : vector<8x8xf32>, vector<8x8xf32>, vector<8x8xf32>, vector<8x8xf32>, vector<8x8xf32>, vector<8x8xf32>, vector<8x8xf32>, vector<8x8xf32> -> vector<8x64xf32>
    %c0_28 = arith.constant 0 : index
    %c0_29 = arith.constant 0 : index
    %c0_30 = arith.constant 0 : index
    %156 = vector.load %arg8[%c0_28, %c0_29, %c0_30] : memref<1x8x64xf32, #tpu.memory_space<vmem>>, vector<1x8x64xf32>
    %157 = vector.shape_cast %156 : vector<1x8x64xf32> to vector<8x64xf32>
    %158 = vector.shape_cast %155 : vector<8x64xf32> to vector<1x8x64xf32>
    tpu.vector_store %arg8[%c0_28, %c0_29, %c0_30], %158 {strides = array<i32>} : memref<1x8x64xf32, #tpu.memory_space<vmem>>, vector<1x8x64xf32>,
    return
  }
  func.func @transform_0(%arg0: i32) -> (i32, i32, i32) {
    %c0_i32 = arith.constant 0 : i32
    %c0_i32_0 = arith.constant 0 : i32
    %c0_i32_1 = arith.constant 0 : i32
    return %arg0, %c0_i32, %c0_i32_0 : i32, i32, i32
  }
  func.func @transform_1(%arg0: i32) -> (i32, i32) {
    %c0_i32 = arith.constant 0 : i32
    %c0_i32_0 = arith.constant 0 : i32
    %c0_i32_1 = arith.constant 0 : i32
    return %c0_i32, %c0_i32_0 : i32, i32
  }
  func.func @transform_2(%arg0: i32) -> (i32, i32) {
    %c0_i32 = arith.constant 0 : i32
    %c0_i32_0 = arith.constant 0 : i32
    %c0_i32_1 = arith.constant 0 : i32
    return %c0_i32, %c0_i32_0 : i32, i32
  }
  func.func @transform_3(%arg0: i32) -> (i32, i32) {
    %c0_i32 = arith.constant 0 : i32
    %c0_i32_0 = arith.constant 0 : i32
    %c0_i32_1 = arith.constant 0 : i32
    return %c0_i32, %c0_i32_0 : i32, i32
  }
  func.func @transform_4(%arg0: i32) -> (i32, i32) {
    %c0_i32 = arith.constant 0 : i32
    %c0_i32_0 = arith.constant 0 : i32
    %c0_i32_1 = arith.constant 0 : i32
    return %c0_i32, %c0_i32_0 : i32, i32
  }
  func.func @transform_5(%arg0: i32) -> (i32, i32) {
    %c0_i32 = arith.constant 0 : i32
    %c0_i32_0 = arith.constant 0 : i32
    %c0_i32_1 = arith.constant 0 : i32
    return %c0_i32, %c0_i32_0 : i32, i32
  }
  func.func @transform_6(%arg0: i32) -> (i32, i32) {
    %c0_i32 = arith.constant 0 : i32
    %c0_i32_0 = arith.constant 0 : i32
    %c0_i32_1 = arith.constant 0 : i32
    return %c0_i32, %c0_i32_0 : i32, i32
  }
  func.func @transform_7(%arg0: i32) -> (i32, i32, i32) {
    %c0_i32 = arith.constant 0 : i32
    %c0_i32_0 = arith.constant 0 : i32
    %c0_i32_1 = arith.constant 0 : i32
    return %arg0, %c0_i32, %c0_i32_0 : i32, i32, i32
  }
  func.func @transform_8(%arg0: i32) -> (i32, i32, i32) {
    %c0_i32 = arith.constant 0 : i32
    %c0_i32_0 = arith.constant 0 : i32
    %c0_i32_1 = arith.constant 0 : i32
    return %arg0, %c0_i32, %c0_i32_0 : i32, i32, i32
  }
}

</mosaic_0001>

<bundles_post_ra>
// kernel: downblock_pallas.1
= control target key start
LH: loop header
LB: loop body
LE: loop exit
PB: predicated region body
PF: predicated region fallthrough
CT: control target
= control target key end

     0   :  { %s1099_s27 = smov 0   ;;  %s1341_s0 = inlined_call_operand.vmem [shape: f32[2,8,256], index: 0, kind: input, shape index: {}]   ;;  %s1342_s1 = inlined_call_operand.vmem [shape: f32[8,72], index: 1, kind: input, shape index: {}]   ;;  %s1343_s2 = inlined_call_operand.vmem [shape: f32[8,1], index: 2, kind: input, shape index: {}]   ;;  %s1344_s3 = inlined_call_operand.vmem [shape: f32[8,72], index: 3, kind: input, shape index: {}]   ;;  %s1345_s4 = inlined_call_operand.vmem [shape: f32[8,1], index: 4, kind: input, shape index: {}]   ;;  %s1346_s5 = inlined_call_operand.vmem [shape: f32[8,256], index: 5, kind: input, shape index: {}]   ;;  %s1347_s6 = inlined_call_operand.vmem [shape: f32[16,8], index: 6, kind: input, shape index: {}]   ;;  %s1348_s7 = inlined_call_operand.vmem [shape: f32[2,8,64], index: 7, kind: output, shape index: {0}]   ;;  %s1349_s8 = inlined_call_operand.vmem [shape: f32[2,8,256], index: 8, kind: output, shape index: {1}]  }
   0x1 LB: > { %s976_s28 = sadd.s32 4294967295, %s1035_s27   ;;  %p980_p0 = scmp.ge.s32.totalorder %s1035_s27, 1  ;;  %s1035_s27 = sphi %s1099_s27, %s19_s27  }
   0x2   : > { %p265_p1 = scmp.lt.s32.totalorder %s1035_s27, 3 }
   0x4   : > { %p266_p2 = pnand %p980_p0, %p265_p1 }
   0x5   : > { %p303_p3 = scmp.lt.s32.totalorder (!%p266_p2), %s976_s28, 1  ;;  %s1037_s11 = smov (!%p266_p2), 112  }
   0x6   : > { %269 = sbr.rel (%p266_p2) target bundleno = 1204 (0x4b4), region = 48  ;;  %s1038_s12 = smov (!%p266_p2), 111  }
   0x7   : > { %s1039_s13 = smov (!%p266_p2), 113   ;;  %s1040_s14 = smov (!%p266_p2), 127  }
   0x8   : > { %s1041_s15 = smov (!%p266_p2), 1   ;;  %s1042_s16 = smov (!%p266_p2), 15  }
   0x9   : > { %s1043_s17 = smov (!%p266_p2), 16   ;;  %s1044_s18 = smov (!%p266_p2), 17  }
   0xa   : > { %s1047_s20 = smov (!%p266_p2), 32   ;;  %s1048_s21 = smov (!%p266_p2), 64  }
   0xb   : > { %s1351_s28 = smov (!%p303_p3, %s976_s28), 1  ;;  %v1154_v5 = vld [vmem:[%s1346_s5] sm:$0xff]  ;;  %v1159_v6 = vld [vmem:[%s1346_s5 + $0x8] sm:$0xff]  ;;  %vm417_vm0 = vcmask 916480   ;;  %vm431_vm1 = vcmask 908288   ;;  %vm403_vm2 = vcmask 924672  }
   0xc   : > { %s1000_s29 = sshll.u32 %s1351_s28, 4  ;;  %v437_v8 = vperm.slane %v1154_v5, 7  ;;  %v438_v9 = vperm.slane %v1159_v6, 7  ;;  %v423_v12 = vperm.slane %v1154_v5, 6  ;;  %v424_v13 = vperm.slane %v1159_v6, 6  ;;  %v319_v31 = vld [vmem:[%s1343_s2] sm:$0xff] }
   0xd   : > { %s307_s10 = scalar_lea.vmem %s1341_s0, %s1000_s29  ;;  %v409_v20 = vperm.slane %v1154_v5, 5  ;;  %v410_v21 = vperm.slane %v1159_v6, 5  ;;  %vm389_vm3 = vcmask 1039360   ;;  %v395_v29 = vperm.slane %v1154_v5, 4  ;;  %s1049_s22 = smov 8  }
   0xe   : > { %v1115_v0 = vld [vmem:[%s307_s10] sm:$0xff]  ;;  %v1123_v1 = vld [vmem:[%s307_s10 + $0x8] sm:$0xff]  ;;  %v396_v30 = vperm.slane %v1159_v6, 4  ;;  %v1045_v32 = vmov 0   ;;  %vm376_vm4 = vcmask 7168   ;;  %v381_v39 = vperm.slane %v1154_v5, 3 }
   0xf   : > { %413 = vrot.lane.b32.xlu1 %v1115_v0, %s1037_s11  ;;  %427 = vrot.lane.b32.xlu0 %v1115_v0, %s1038_s12  ;;  %v382_v40 = vperm.slane %v1159_v6, 3  ;;  %vm362_vm5 = vcmask 121856   ;;  %v367_v42 = vperm.slane %v1154_v5, 2  ;;  %v368_v43 = vperm.slane %v1159_v6, 2  ;;  %s1050_s23 = smov 24   ;;  %s1051_s24 = smov 56  }
  0x10   : > { %399 = vrot.lane.b32.xlu2 %v1115_v0, %s1039_s13  ;;  %1027 = vset.pattern.permute.xlu1 %v1045_v32  ;;  %vm348_vm6 = vcmask 130048   ;;  %v353_v54 = vperm.slane %v1154_v5, 1  ;;  %v354_v55 = vperm.slane %v1159_v6, 1  ;;  %vm334_vm7 = vcmask 138240   ;;  %s1052_s25 = smov 40   ;;  %s1053_s26 = smov 48  }
  0x11   : > { %1028 = vset.pattern.permute.xlu0 %v1045_v32  ;;  %v339_v63 = vperm.slane %v1154_v5, 0  ;;  %vm446_vm8 = vcmask 588800   ;;  %vm875_vm9 = vcmask 64512   ;;  %vm878_vm10 = vcmask 195584  }
  0x12   : > { %vm880_vm11 = vcmask 261120   ;;  %vm882_vm12 = vcmask 326656   ;;  %vm884_vm13 = vcmask 392192   ;;  %vm886_vm14 = vcmask 457728  }
  0x13   : > { %vm888_vm15 = vcmask 523264  }
  0x17   : > { %415 = vrot.lane.b32.xlu1 %v1123_v1, %s1037_s11  ;;  %429 = vrot.lane.b32.xlu0 %v1123_v1, %s1038_s12 }
  0x18   : > { %401 = vrot.lane.b32.xlu2 %v1123_v1, %s1039_s13 }
  0x1f   : > { %387 = vrot.lane.b32.xlu1 %v1123_v1, %s1040_s14  ;;  %385 = vrot.lane.b32.xlu0 %v1115_v0, %s1040_s14 }
  0x20   : > { %371 = vrot.lane.b32.xlu2 %v1123_v1, %s1041_s15 }
  0x27   : > { %357 = vrot.lane.b32.xlu1 %v1123_v1, %s1042_s16  ;;  %374 = vrot.lane.b32.xlu0 %v1115_v0, %s1041_s15 }
  0x28   : > { %360 = vrot.lane.b32.xlu2 %v1115_v0, %s1042_s16 }
  0x2f   : > { %346 = vrot.lane.b32.xlu1 %v1115_v0, %s1043_s17  ;;  %343 = vrot.lane.b32.xlu0 %v1123_v1, %s1043_s17 }
  0x30   : > { %328 = vrot.lane.b32.xlu2 %v1123_v1, %s1044_s18 }
  0x37   : > { %332 = vrot.lane.b32.xlu0 %v1115_v0, %s1044_s18  ;;  %443 = vperm.xlu1 %1027, %v319_v31  }
  0x6a   : > { %v400_v2 = vpop.permute.xlu2 %399 }
  0x72   : > { %v402_v7 = vpop.permute.xlu2 %401 }
  0x73   : > { %v404_v22 = vsel %vm403_vm2, %v400_v2, %v402_v7  ;;  %v408_v23 = vsel %vm403_vm2, %v402_v7, %v400_v2 }
  0x74   : > { %v411_v27 = vmul.f32 %v409_v20, %v404_v22  ;;  %v412_v28 = vmul.f32 %v410_v21, %v408_v23 }
  0x7a   : > { %v372_v26 = vpop.permute.xlu2 %371 }
  0x81   : > { %v414_v3 = vpop.permute.xlu1 %413  ;;  %v428_v4 = vpop.permute.xlu0 %427 }
  0x82   : > { %v361_v41 = vpop.permute.xlu2 %360 }
  0x89   : > { %v416_v10 = vpop.permute.xlu1 %415  ;;  %v430_v11 = vpop.permute.xlu0 %429 }
  0x8a   : > { %v418_v14 = vsel %vm417_vm0, %v414_v3, %v416_v10  ;;  %v422_v15 = vsel %vm417_vm0, %v416_v10, %v414_v3  ;;  %v432_v16 = vsel %vm431_vm1, %v428_v4, %v430_v11  ;;  %v436_v17 = vsel %vm431_vm1, %v430_v11, %v428_v4  ;;  %v329_v62 = vpop.permute.xlu2 %328  ;;  %v317_v10 = vld [vmem:[%s1342_s1] sm:$0xff] }
  0x8b   : > { %v439_v18 = vmul.f32 %v437_v8, %v432_v16  ;;  %v440_v19 = vmul.f32 %v438_v9, %v436_v17  ;;  %v425_v24 = vmul.f32 %v423_v12, %v418_v14  ;;  %v426_v25 = vmul.f32 %v424_v13, %v422_v15 }
  0x8d   : > { %457 = vmatpush.msra.mxu0 %v439_v18  ;;  %477 = vmatpush.msra.mxu1 %v440_v19 }
  0x8f   : > { %458 = vmatpush.msra.mxu0 %v425_v24  ;;  %478 = vmatpush.msra.mxu1 %v426_v25 }
  0x91   : > { %v388_v33 = vpop.permute.xlu1 %387  ;;  %459 = vmatpush.msra.mxu0 %v411_v27  ;;  %479 = vmatpush.msra.mxu1 %v412_v28  ;;  %v386_v34 = vpop.permute.xlu0 %385 }
  0x92   : > { %v390_v35 = vsel %vm389_vm3, %v386_v34, %v388_v33  ;;  %v394_v36 = vsel %vm389_vm3, %v388_v33, %v386_v34 }
  0x93   : > { %v397_v37 = vmul.f32 %v395_v29, %v390_v35  ;;  %v398_v38 = vmul.f32 %v396_v30, %v394_v36 }
  0x95   : > { %460 = vmatpush.msra.mxu0 %v397_v37  ;;  %480 = vmatpush.msra.mxu1 %v398_v38  ;;  %v320_v38 = vld [vmem:[%s1345_s4] sm:$0xff] }
  0x97   : > { %461 = vmatpush.msra.mxu0 %v1115_v0  ;;  %481 = vmatpush.msra.mxu1 %v1123_v1  ;;  %v340_v0 = vperm.slane %v1159_v6, 0 }
  0x99   : > { %v358_v44 = vpop.permute.xlu1 %357  ;;  %v375_v45 = vpop.permute.xlu0 %374 }
  0x9a   : > { %v377_v46 = vsel %vm376_vm4, %v375_v45, %v372_v26  ;;  %v380_v47 = vsel %vm376_vm4, %v372_v26, %v375_v45  ;;  %v363_v48 = vsel %vm362_vm5, %v361_v41, %v358_v44  ;;  %v366_v49 = vsel %vm362_vm5, %v358_v44, %v361_v41 }
  0x9b   : > { %v383_v50 = vmul.f32 %v381_v39, %v380_v47  ;;  %v384_v51 = vmul.f32 %v382_v40, %v377_v46  ;;  %v369_v52 = vmul.f32 %v367_v42, %v366_v49  ;;  %v370_v53 = vmul.f32 %v368_v43, %v363_v48 }
  0x9d   : > { %462 = vmatpush.msra.mxu0 %v383_v50  ;;  %482 = vmatpush.msra.mxu1 %v384_v51 }
  0x9f   : > { %463 = vmatpush.msra.mxu0 %v369_v52  ;;  %483 = vmatpush.msra.mxu1 %v370_v53 }
  0xa1   : > { %v347_v56 = vpop.permute.xlu1 %346  ;;  %v344_v57 = vpop.permute.xlu0 %343 }
  0xa2   : > { %v349_v58 = vsel %vm348_vm6, %v347_v56, %v344_v57  ;;  %v352_v59 = vsel %vm348_vm6, %v344_v57, %v347_v56 }
  0xa3   : > { %v355_v60 = vmul.f32 %v353_v54, %v352_v59  ;;  %v356_v61 = vmul.f32 %v354_v55, %v349_v58 }
  0xa5   : > { %464 = vmatpush.msra.mxu0 %v355_v60  ;;  %484 = vmatpush.msra.mxu1 %v356_v61 }
  0xa9   : > { %v333_v1 = vpop.permute.xlu0 %332  ;;  %v444_v11 = vpop.permute.xlu1 %443 }
  0xaa   : > { %v335_v2 = vsel %vm334_vm7, %v333_v1, %v329_v62  ;;  %v338_v3 = vsel %vm334_vm7, %v329_v62, %v333_v1 }
  0xab   : > { %v341_v4 = vmul.f32 %v339_v63, %v338_v3  ;;  %v342_v7 = vmul.f32 %v340_v0, %v335_v2 }
  0xad   : > { %465 = vmatpush.msra.mxu0 %v341_v4  ;;  %485 = vmatpush.msra.mxu1 %v342_v7  ;;  %v318_v7 = vld [vmem:[%s1344_s3] sm:$0xff] }
  0xae   : > { %986 = vmatmul.msk.f32.vlgmr.msra.gmra.mxu0 %vm446_vm8, %v317_v10  ;;  %987 = vmatmul.msk.f32.vlgmr.msra.gmra.mxu1 %vm446_vm8, %v317_v10 }
 0x12b   : > { %v467_v14 = vpop.f32.mrf.mxu0  ;;  %v487_v15 = vpop.f32.mrf.mxu1 }
 0x12c   : > { %v468_v16 = vadd.f32 %v467_v14, %v444_v11  ;;  %v488_v17 = vadd.f32 %v487_v15, %v444_v11 }
 0x12e   : > { %v490_v18 = vmax.f32 %v468_v16, 0.0  ;;  %v491_v19 = vmax.f32 %v488_v17, 0.0 }
 0x130   : > { %560 = vrot.lane.b32.xlu1 %v490_v18, %s1037_s11  ;;  %571 = vrot.lane.b32.xlu2 %v490_v18, %s1038_s12 }
 0x131   : > { %573 = vrot.lane.b32.xlu0 %v491_v19, %s1038_s12 }
 0x138   : > { %551 = vrot.lane.b32.xlu1 %v491_v19, %s1039_s13  ;;  %562 = vrot.lane.b32.xlu2 %v491_v19, %s1037_s11 }
 0x139   : > { %549 = vrot.lane.b32.xlu0 %v490_v18, %s1039_s13 }
 0x140   : > { %527 = vrot.lane.b32.xlu1 %v491_v19, %s1041_s15  ;;  %538 = vrot.lane.b32.xlu2 %v490_v18, %s1040_s14 }
 0x141   : > { %540 = vrot.lane.b32.xlu0 %v491_v19, %s1040_s14 }
 0x148   : > { %519 = vrot.lane.b32.xlu1 %v490_v18, %s1042_s16  ;;  %530 = vrot.lane.b32.xlu2 %v490_v18, %s1041_s15 }
 0x149   : > { %516 = vrot.lane.b32.xlu0 %v491_v19, %s1042_s16  ;;  %s316_s16 = scalar_lea.vmem %s1349_s8, %s1000_s29 }
 0x150   : > { %493 = vrot.lane.b32.xlu1 %v491_v19, %s1044_s18  ;;  %505 = vrot.lane.b32.xlu2 %v491_v19, %s1043_s17 }
 0x151   : > { %508 = vrot.lane.b32.xlu0 %v490_v18, %s1043_s17 }
 0x158   : > { %497 = vrot.lane.b32.xlu2 %v490_v18, %s1044_s18 }
 0x159   : > { %584 = vperm.xlu0 %1028, %v320_v38  }
 0x18a   : > { %v572_v22 = vpop.permute.xlu2 %571 }
 0x192   : > { %v563_v23 = vpop.permute.xlu2 %562 }
 0x19a   : > { %v539_v32 = vpop.permute.xlu2 %538 }
 0x1a2   : > { %v561_v24 = vpop.permute.xlu1 %560 }
 0x1a3   : > { %v574_v25 = vpop.permute.xlu0 %573  ;;  %v564_v26 = vsel %vm417_vm0, %v561_v24, %v563_v23  ;;  %v568_v27 = vsel %vm417_vm0, %v563_v23, %v561_v24 }
 0x1a4   : > { %v575_v28 = vsel %vm431_vm1, %v572_v22, %v574_v25  ;;  %v579_v31 = vsel %vm431_vm1, %v574_v25, %v572_v22  ;;  %v569_v35 = vmul.f32 %v564_v26, %v423_v12  ;;  %v570_v36 = vmul.f32 %v568_v27, %v424_v13  ;;  %v531_v13 = vpop.permute.xlu2 %530  ;;  %v323_v22 = vld [vmem:[%s1347_s6] sm:$0xff] }
 0x1a5   : > { %v580_v33 = vmul.f32 %v575_v28, %v437_v8  ;;  %v581_v34 = vmul.f32 %v579_v31, %v438_v9 }
 0x1a7   : > { %597 = vmatpush.msra.mxu2 %v580_v33  ;;  %617 = vmatpush.msra.mxu3 %v581_v34 }
 0x1a9   : > { %598 = vmatpush.msra.mxu2 %v569_v35  ;;  %618 = vmatpush.msra.mxu3 %v570_v36 }
 0x1aa   : > { %v552_v37 = vpop.permute.xlu1 %551 }
 0x1ab   : > { %v550_v41 = vpop.permute.xlu0 %549 }
 0x1ac   : > { %v553_v8 = vsel %vm403_vm2, %v550_v41, %v552_v37  ;;  %v557_v9 = vsel %vm403_vm2, %v552_v37, %v550_v41 }
 0x1ad   : > { %v558_v44 = vmul.f32 %v553_v8, %v409_v20  ;;  %v559_v12 = vmul.f32 %v557_v9, %v410_v21  ;;  %v506_v21 = vpop.permute.xlu2 %505 }
 0x1af   : > { %599 = vmatpush.msra.mxu2 %v558_v44  ;;  %619 = vmatpush.msra.mxu3 %v559_v12 }
 0x1b2   : > { %v528_v45 = vpop.permute.xlu1 %527 }
 0x1b3   : > { %v541_v46 = vpop.permute.xlu0 %540  ;;  %v532_v20 = vsel %vm376_vm4, %v531_v13, %v528_v45  ;;  %v535_v51 = vsel %vm376_vm4, %v528_v45, %v531_v13 }
 0x1b4   : > { %v542_v47 = vsel %vm389_vm3, %v539_v32, %v541_v46  ;;  %v546_v48 = vsel %vm389_vm3, %v541_v46, %v539_v32  ;;  %v536_v52 = vmul.f32 %v535_v51, %v381_v39  ;;  %v537_v53 = vmul.f32 %v532_v20, %v382_v40 }
 0x1b5   : > { %v547_v49 = vmul.f32 %v542_v47, %v395_v29  ;;  %v548_v50 = vmul.f32 %v546_v48, %v396_v30  ;;  %v498_v60 = vpop.permute.xlu2 %497 }
 0x1b7   : > { %600 = vmatpush.msra.mxu2 %v547_v49  ;;  %620 = vmatpush.msra.mxu3 %v548_v50 }
 0x1b9   : > { %601 = vmatpush.msra.mxu2 %v490_v18  ;;  %621 = vmatpush.msra.mxu3 %v491_v19  ;;  %v324_v19 = vld [vmem:[%s1347_s6 + $0x8] sm:$0xff] }
 0x1ba   : > { %v520_v56 = vpop.permute.xlu1 %519  ;;  %669 = vmatpush.msrb.mxu0 %v324_v19  ;;  %693 = vmatpush.msrb.mxu1 %v324_v19 }
 0x1bb   : > { %602 = vmatpush.msra.mxu2 %v536_v52  ;;  %622 = vmatpush.msra.mxu3 %v537_v53  ;;  %v517_v29 = vpop.permute.xlu0 %516 }
 0x1bc   : > { %v521_v30 = vsel %vm362_vm5, %v520_v56, %v517_v29  ;;  %v524_v57 = vsel %vm362_vm5, %v517_v29, %v520_v56  ;;  %670 = vmatpush.msrb.mxu0 %v323_v22  ;;  %694 = vmatpush.msrb.mxu1 %v323_v22 }
 0x1bd   : > { %v525_v58 = vmul.f32 %v524_v57, %v367_v42  ;;  %v526_v59 = vmul.f32 %v521_v30, %v368_v43 }
 0x1be   : > { %769 = vmatpush.msra.mxu0 %v324_v19  ;;  %793 = vmatpush.msra.mxu1 %v324_v19 }
 0x1bf   : > { %603 = vmatpush.msra.mxu2 %v525_v58  ;;  %623 = vmatpush.msra.mxu3 %v526_v59 }
 0x1c0   : > { %770 = vmatpush.msra.mxu0 %v323_v22  ;;  %794 = vmatpush.msra.mxu1 %v323_v22 }
 0x1c2   : > { %v494_v39 = vpop.permute.xlu1 %493 }
 0x1c3   : > { %v509_v61 = vpop.permute.xlu0 %508  ;;  %v499_v40 = vsel %vm334_vm7, %v498_v60, %v494_v39  ;;  %v502_v62 = vsel %vm334_vm7, %v494_v39, %v498_v60 }
 0x1c4   : > { %v510_v1 = vsel %vm348_vm6, %v509_v61, %v506_v21  ;;  %v513_v2 = vsel %vm348_vm6, %v506_v21, %v509_v61  ;;  %v503_v43 = vmul.f32 %v502_v62, %v339_v63  ;;  %v504_v4 = vmul.f32 %v499_v40, %v340_v0 }
 0x1c5   : > { %v514_v3 = vmul.f32 %v513_v2, %v353_v54  ;;  %v515_v42 = vmul.f32 %v510_v1, %v354_v55 }
 0x1c7   : > { %604 = vmatpush.msra.mxu2 %v514_v3  ;;  %624 = vmatpush.msra.mxu3 %v515_v42 }
 0x1c9   : > { %605 = vmatpush.msra.mxu2 %v503_v43  ;;  %625 = vmatpush.msra.mxu3 %v504_v4 }
 0x1ca   : > { %988 = vmatmul.msk.f32.vlgmr.msra.gmra.mxu2 %vm446_vm8, %v318_v7  ;;  %989 = vmatmul.msk.f32.vlgmr.msra.gmra.mxu3 %vm446_vm8, %v318_v7 }
 0x1cb   : > { %v585_v54 = vpop.permute.xlu0 %584  ;;  %717 = vmatpush.msrb.mxu2 %v324_v19  ;;  %741 = vmatpush.msrb.mxu3 %v324_v19 }
 0x1cd   : > { %718 = vmatpush.msrb.mxu2 %v323_v22  ;;  %742 = vmatpush.msrb.mxu3 %v323_v22 }
 0x1cf   : > { %841 = vmatpush.msra.mxu3 %v324_v19  ;;  %817 = vmatpush.msra.mxu2 %v324_v19 }
 0x1d1   : > { %842 = vmatpush.msra.mxu3 %v323_v22  ;;  %818 = vmatpush.msra.mxu2 %v323_v22 }
 0x24d   : > { %v607_v55 = vpop.f32.mrf.mxu2  ;;  %v627_v10 = vpop.f32.mrf.mxu3 }
 0x24e   : > { %v608_v11 = vadd.f32 %v607_v55, %v585_v54  ;;  %v628_v14 = vadd.f32 %v627_v10, %v585_v54 }
 0x250   : > { %v630_v5 = vmax.f32 %v608_v11, 0.0  ;;  %v631_v6 = vmax.f32 %v628_v14, 0.0 }
 0x252   : > { %645 = vst [vmem:[%s316_s16] sm:$0xff] %v630_v5  ;;  %636 = vrot.lane.b32.xlu2 %v631_v6, %s1040_s14  ;;  %634 = vrot.lane.b32.xlu1 %v630_v5, %s1040_s14 }
 0x253   : > { %646 = vst [vmem:[%s316_s16 + $0x8] sm:$0xff] %v631_v6 }
 0x2ac   : > { %v637_v63 = vpop.permute.xlu2 %636 }
 0x2c4   : > { %v635_v0 = vpop.permute.xlu1 %634 }
 0x2c5   : > { %v638_v15 = vsel %vm389_vm3, %v635_v0, %v637_v63  ;;  %v642_v16 = vsel %vm389_vm3, %v637_v63, %v635_v0 }
 0x2c6   : > { %v643_v17 = vmax.f32 %v630_v5, %v638_v15  ;;  %v644_v18 = vmax.f32 %v631_v6, %v642_v16 }
 0x2c8   : > { %748 = vrot.lane.b32.xlu2 %v644_v18, %s1037_s11  ;;  %648 = vrot.lane.b32.xlu1 %v643_v17, %s1037_s11  ;;  %s1046_s11 = smov 96  }
 0x322   : > { %v749_v25 = vpop.permute.xlu2 %748 }
 0x323   : > { %v751_v26 = vmax.f32 %v644_v18, %v749_v25 }
 0x33a   : > { %v649_v23 = vpop.permute.xlu1 %648 }
 0x33b   : > { %v651_v24 = vmax.f32 %v643_v17, %v649_v23 }
 0x33d   : > { %675 = vrot.lane.b32.xlu2 %v651_v24, %s1046_s11  ;;  %723 = vrot.lane.b32.xlu1 %v651_v24, %s1047_s20 }
 0x33e   : > { %699 = vrot.lane.b32.xlu0 %v651_v24, %s1048_s21  ;;  %990 = vmatmul.msk.f32.vlgmr.msrb.gmra.mxu0 %vm348_vm6, %v651_v24 }
 0x345   : > { %775 = vrot.lane.b32.xlu2 %v751_v26, %s1046_s11  ;;  %823 = vrot.lane.b32.xlu1 %v751_v26, %s1047_s20 }
 0x346   : > { %799 = vrot.lane.b32.xlu0 %v751_v26, %s1048_s21  ;;  %994 = vmatmul.msk.f32.vlgmr.msra.gmra.mxu0 %vm348_vm6, %v751_v26 }
 0x397   : > { %v676_v27 = vpop.permute.xlu2 %675 }
 0x398   : > { %991 = vmatmul.msk.f32.vlgmr.msrb.gmra.mxu1 %vm348_vm6, %v676_v27 }
 0x39f   : > { %v776_v28 = vpop.permute.xlu2 %775 }
 0x3a0   : > { %995 = vmatmul.msk.f32.vlgmr.msra.gmra.mxu1 %vm348_vm6, %v776_v28 }
 0x3af   : > { %v724_v31 = vpop.permute.xlu1 %723 }
 0x3b0   : > { %v700_v32 = vpop.permute.xlu0 %699  ;;  %993 = vmatmul.msk.f32.vlgmr.msrb.gmra.mxu3 %vm348_vm6, %v724_v31 }
 0x3b1   : > { %992 = vmatmul.msk.f32.vlgmr.msrb.gmra.mxu2 %vm348_vm6, %v700_v32 }
 0x3b7   : > { %v824_v33 = vpop.permute.xlu1 %823 }
 0x3b8   : > { %v800_v34 = vpop.permute.xlu0 %799  ;;  %997 = vmatmul.msk.f32.vlgmr.msra.gmra.mxu3 %vm348_vm6, %v824_v33 }
 0x3b9   : > { %996 = vmatmul.msk.f32.vlgmr.msra.gmra.mxu2 %vm348_vm6, %v800_v34 }
 0x3bb   : > { %v672_v35 = vpop.f32.mrf.mxu0 }
 0x3c3   : > { %v772_v36 = vpop.f32.mrf.mxu0 }
 0x3c4   : > { %860 = vrot.lane.b32.xlu0 %v772_v36, %s1047_s20 }
 0x415   : > { %v696_v37 = vpop.f32.mrf.mxu1 }
 0x416   : > { %848 = vrot.lane.b32.xlu0 %v696_v37, %s1049_s22 }
 0x41d   : > { %v796_v9 = vpop.f32.mrf.mxu1 }
 0x433   : > { %v744_v38 = vpop.f32.mrf.mxu3 }
 0x434   : > { %v720_v41 = vpop.f32.mrf.mxu2  ;;  %856 = vrot.lane.b32.xlu2 %v744_v38, %s1050_s23 }
 0x435   : > { %852 = vrot.lane.b32.xlu1 %v720_v41, %s1043_s17  ;;  %s983_s17 = sshll.u32 %s1351_s28, 3 }
 0x436   : > { %v861_v12 = vpop.permute.xlu0 %860  ;;  %s311_s10 = scalar_lea.vmem %s1348_s7, %s983_s17 }
 0x43b   : > { %v844_v8 = vpop.f32.mrf.mxu3 }
 0x43c   : > { %v820_v44 = vpop.f32.mrf.mxu2  ;;  %872 = vrot.lane.b32.xlu0 %v844_v8, %s1051_s24 }
 0x43d   : > { %864 = vrot.lane.b32.xlu1 %v796_v9, %s1052_s25  ;;  %868 = vrot.lane.b32.xlu2 %v820_v44, %s1053_s26 }
 0x488   : > { %v849_v13 = vpop.permute.xlu0 %848 }
 0x489   : > { %v876_v47 = vsel %vm875_vm9, %v672_v35, %v849_v13 }
 0x48e   : > { %v857_v45 = vpop.permute.xlu2 %856 }
 0x497   : > { %v869_v51 = vpop.permute.xlu2 %868 }
 0x4a7   : > { %v853_v46 = vpop.permute.xlu1 %852 }
 0x4a8   : > { %v877_v48 = vsel %vm348_vm6, %v876_v47, %v853_v46 }
 0x4a9   : > { %v879_v49 = vsel %vm878_vm10, %v877_v48, %v857_v45 }
 0x4aa   : > { %v881_v20 = vsel %vm880_vm11, %v879_v49, %v861_v12 }
 0x4ae   : > { %v873_v53 = vpop.permute.xlu0 %872 }
 0x4af   : > { %v865_v50 = vpop.permute.xlu1 %864 }
 0x4b0   : > { %v883_v21 = vsel %vm882_vm12, %v881_v20, %v865_v50 }
 0x4b1   : > { %v885_v52 = vsel %vm884_vm13, %v883_v21, %v869_v51 }
 0x4b2   : > { %v887_v56 = vsel %vm886_vm14, %v885_v52, %v873_v53 }
 0x4b3   : > { %889 = vst.msk [vmem:[%s311_s10] sm:$0xff] %vm888_vm15, %v887_v56 }
 0x4b4 PF: > { %s19_s27 = sadd.s32 1, %s1035_s27  }
 0x4b5   : > { %p16_p4 = scmp.ge.s32.totalorder %s19_s27, 4  }
 0x4b7   :  { %18 = sbr.rel (!%p16_p4) target bundleno = 1 (0x1), region = 90 }

</bundles_post_ra>
